<compile_context>
chip_gen: v7x
topology: tpu7x:2x2x1
jax: 0.10.0
libtpu: 0.0.40
codegen_flags: <defaults>
</compile_context>

<pallas_src>
import math

import numpy as np

import jax
import jax.numpy as jnp
from jax.experimental import pallas as pl
from jax.experimental.pallas import tpu as pltpu

LANE = 128
TM_TARGET = 4096  # rows per block: 4096 x 128 x 4 B = 2 MiB output tile


def _ceil_div(a, b):
    return -(-a // b)


def _round_up(a, m):
    return _ceil_div(a, m) * m


def make_sinusoidal_pe(d_model: int, max_len: int = 366 + 1, T: float = 1000.0,
                       out_dtype=jnp.float32):
    """Returns (forward, forward_add):
         forward(positions[B,S])                        -> [B,S,d_model]  (module semantics)
         forward_add(positions[B,S], act[B,S,d_model])  -> act + PE       (fused add)
    """
    assert d_model % 2 == 0, "d_model must be even (matches 0::2 / 1::2 split)"

    ppb = LANE // d_model if (d_model < LANE and LANE % d_model == 0) else 1
    lane_w = ppb * d_model
    max_pos = float(max_len - 1)

    # Host-precomputed per-lane constants, merged into one (2, lane_w) input:
    #   row 0: div_term per lane; row 1: sin-phase (0 even dim / pi/2 odd dim -> cos).
    d_idx = np.arange(d_model)
    div_np = np.exp((d_idx // 2).astype(np.float64) * (-2.0 * math.log(T) / d_model))
    phase_np = np.where(d_idx % 2 == 0, 0.0, np.pi / 2.0)
    divphase = jnp.asarray(
        np.stack([np.tile(div_np, ppb), np.tile(phase_np, ppb)]), jnp.float32)

    def _pe_block(pos_ref, dp_ref):
        # pos_ref: (tm, ppb) f32 ; dp_ref: (2, lane_w) f32 ; returns (tm, lane_w) f32
        tm = pos_ref.shape[0]
        # clamp(0, max_len-1) then .long(): floor == trunc because values are >= 0
        # after the clamp (keep clamp-before-floor ordering).
        p = jnp.floor(jnp.clip(pos_ref[...], 0.0, max_pos))
        if ppb == 1:
            p_x = jnp.broadcast_to(p, (tm, lane_w))
        else:
            # Expand each position across its d_model lanes -> lane-dense row.
            # Kept as broadcast+concat (2-D native layouts) for robust lowering.
            p_x = jnp.concatenate(
                [jnp.broadcast_to(p[:, g:g + 1], (tm, d_model)) for g in range(ppb)],
                axis=-1)
        return jnp.sin(p_x * dp_ref[0:1, :] + dp_ref[1:2, :])

    def pe_kernel(pos_ref, dp_ref, out_ref):
        out_ref[...] = _pe_block(pos_ref, dp_ref).astype(out_ref.dtype)

    def pe_add_kernel(pos_ref, dp_ref, act_ref, out_ref):
        out_ref[...] = (act_ref[...].astype(jnp.float32)
                        + _pe_block(pos_ref, dp_ref)).astype(out_ref.dtype)

    def _launch(positions, act):
        positions = positions.astype(jnp.float32)
        B, S = positions.shape
        n = B * S
        rows = _ceil_div(n, ppb)          # number of 128-lane output rows
        n_pad = rows * ppb                # positions after padding to full rows

        # Row tiling: <= 2 MiB output blocks; always >= 2 "parallel" blocks
        # when there is enough work so both v7x TensorCores are used.
        if rows <= 16:
            tm = rows                     # single tiny block (full extent)
        else:
            nblk = max(2, _ceil_div(rows, TM_TARGET))
            tm = _round_up(_ceil_div(rows, nblk), 8)
        grid = _ceil_div(rows, tm)        # ragged last block is masked by Pallas

        pos_flat = positions.reshape(n)
        if n_pad != n:
            pos_flat = jnp.pad(pos_flat, (0, n_pad - n))
        pos2d = pos_flat.reshape(rows, ppb)

        in_specs = [
            pl.BlockSpec((tm, ppb), lambda i: (i, 0)),
            pl.BlockSpec((2, lane_w), lambda i: (0, 0)),
        ]
        args = [pos2d, divphase]
        if act is None:
            kernel = pe_kernel
            odt = out_dtype
        else:
            kernel = pe_add_kernel
            odt = act.dtype
            act_flat = act.reshape(n, d_model)
            if n_pad != n:
                act_flat = jnp.pad(act_flat, ((0, n_pad - n), (0, 0)))
            # packed (rows, ppb*d_model) is bit-identical to row-major (n_pad, d_model)
            args.append(act_flat.reshape(rows, lane_w))
            in_specs.append(pl.BlockSpec((tm, lane_w), lambda i: (i, 0)))

        out2d = pl.pallas_call(
            kernel,
            out_shape=jax.ShapeDtypeStruct((rows, lane_w), odt),
            grid=(grid,),
            in_specs=in_specs,
            out_specs=pl.BlockSpec((tm, lane_w), lambda i: (i, 0)),
            compiler_params=pltpu.CompilerParams(
                dimension_semantics=("parallel",)),
        )(*args)

        out = out2d.reshape(n_pad, d_model)
        if n_pad != n:                    # only when ppb doesn't divide B*S (tiny copy)
            out = out[:n]
        return out.reshape(B, S, d_model)

    @jax.jit
    def forward(positions: jax.Array) -> jax.Array:
        return _launch(positions, None)

    @jax.jit
    def forward_add(positions: jax.Array, act: jax.Array) -> jax.Array:
        return _launch(positions, act)

    return forward, forward_add


def reference_pe_np(positions, d_model, max_len=366 + 1, T=1000.0):
    """float64 numpy reproduction of the PyTorch module, for verification."""
    pos = np.asarray(positions, dtype=np.float64)
    idx = np.clip(pos, 0.0, max_len - 1).astype(np.int64)        # clamp + .long()
    d = np.arange(d_model)
    div = np.exp((d // 2).astype(np.float64) * (-2.0 * math.log(T) / d_model))
    ang = idx[..., None].astype(np.float64) * div
    return np.where(d % 2 == 0, np.sin(ang), np.cos(ang)).astype(np.float32)


if __name__ == "__main__":
    d_model = 32
    key = jax.random.PRNGKey(0)
    k1, k2, k3, k4 = jax.random.split(key, 4)
    forward, forward_add = make_sinusoidal_pe(d_model)

    def check(out, ref, tag):
        out_np = np.asarray(out)
        assert out_np.shape == ref.shape, (tag, out_np.shape, ref.shape)
        err = float(np.max(np.abs(out_np - ref)))
        assert err < 5e-4, (tag, err)

    # 1) small shape (single block); out-of-range values exercise the clamp
    B, S = 2, 8
    pos = jax.random.uniform(k1, (B, S), minval=-5.0, maxval=400.0)
    out = jax.block_until_ready(forward(pos))
    check(out, reference_pe_np(np.asarray(pos), d_model), "small")

    # 2) fused activation + PE (downstream add folded into the same kernel)
    act = jax.random.normal(k2, (B, S, d_model), jnp.float32)
    out_add = jax.block_until_ready(forward_add(pos, act))
    check(out_add, np.asarray(act) + reference_pe_np(np.asarray(pos), d_model),
          "fused-add")

    # 3) ragged case: B*S not a multiple of the per-row packing factor
    B3, S3 = 3, 7
    pos3 = jax.random.uniform(k3, (B3, S3), minval=-5.0, maxval=400.0)
    out3 = jax.block_until_ready(forward(pos3))
    check(out3, reference_pe_np(np.asarray(pos3), d_model), "ragged")

    # 4) multi-block "parallel" grid with a masked partial last block
    B4, S4 = 5, 16            # rows = 20 -> tm = 16, grid = 2 (last block ragged)
    pos4 = jax.random.uniform(k4, (B4, S4), minval=-5.0, maxval=400.0)
    out4 = jax.block_until_ready(forward(pos4))
    check(out4, reference_pe_np(np.asarray(pos4), d_model), "multi-block")

    print("KERNEL_OK")
</pallas_src>

<mosaic_0001>
module attributes {stable_mosaic.version = 11 : i64} {
  func.func @pe_kernel(%arg0: i32, %arg1: memref<4x4xf32, #tpu.memory_space<vmem>>, %arg2: memref<2x128xf32, #tpu.memory_space<vmem>>, %arg3: memref<4x128xf32, #tpu.memory_space<vmem>>) attributes {dimension_semantics = [#tpu.dimension_semantics<parallel>], iteration_bounds = array<i64: 1>, scalar_prefetch = 0 : i64, scratch_operands = 0 : i64, tpu.core_type = #tpu.core_type<tc>, window_params = [{transform_indices = @transform_0, window_bounds = array<i64: 4, 4>}, {pipeline_mode = #tpu.pipeline_mode<synchronous>, transform_indices = @transform_1, window_bounds = array<i64: 2, 128>}, {transform_indices = @transform_2, window_bounds = array<i64: 4, 128>}]} {
    %c0 = arith.constant 0 : index
    %c0_0 = arith.constant 0 : index
    %0 = vector.load %arg1[%c0, %c0_0] : memref<4x4xf32, #tpu.memory_space<vmem>>, vector<4x4xf32>
    %cst = arith.constant 0.000000e+00 : f32
    %cst_1 = arith.constant 3.660000e+02 : f32
    %1 = vector.broadcast %cst : f32 to vector<4x4xf32>
    %2 = arith.maximumf %1, %0 : vector<4x4xf32>
    %3 = vector.broadcast %cst_1 : f32 to vector<4x4xf32>
    %4 = arith.minimumf %3, %2 : vector<4x4xf32>
    %5 = math.floor %4 : vector<4x4xf32>
    %6 = vector.extract_strided_slice %5 {offsets = [0, 0], sizes = [4, 1], strides = [1, 1]} : vector<4x4xf32> to vector<4x1xf32>
    %7 = vector.shape_cast %6 : vector<4x1xf32> to vector<4x1xf32>
    %8 = vector.broadcast %7 : vector<4x1xf32> to vector<4x32xf32>
    %9 = vector.extract_strided_slice %5 {offsets = [0, 1], sizes = [4, 1], strides = [1, 1]} : vector<4x4xf32> to vector<4x1xf32>
    %10 = vector.shape_cast %9 : vector<4x1xf32> to vector<4x1xf32>
    %11 = vector.broadcast %10 : vector<4x1xf32> to vector<4x32xf32>
    %12 = vector.extract_strided_slice %5 {offsets = [0, 2], sizes = [4, 1], strides = [1, 1]} : vector<4x4xf32> to vector<4x1xf32>
    %13 = vector.shape_cast %12 : vector<4x1xf32> to vector<4x1xf32>
    %14 = vector.broadcast %13 : vector<4x1xf32> to vector<4x32xf32>
    %15 = vector.extract_strided_slice %5 {offsets = [0, 3], sizes = [4, 1], strides = [1, 1]} : vector<4x4xf32> to vector<4x1xf32>
    %16 = vector.shape_cast %15 : vector<4x1xf32> to vector<4x1xf32>
    %17 = vector.broadcast %16 : vector<4x1xf32> to vector<4x32xf32>
    %18 = tpu.concatenate %8, %11, %14, %17 in 1 : vector<4x32xf32>, vector<4x32xf32>, vector<4x32xf32>, vector<4x32xf32> -> vector<4x128xf32>
    %c0_2 = arith.constant 0 : index
    %c0_3 = arith.constant 0 : index
    %19 = vector.load %arg2[%c0_2, %c0_3] : memref<2x128xf32, #tpu.memory_space<vmem>>, vector<1x128xf32>
    %20 = vector.broadcast %19 : vector<1x128xf32> to vector<4x128xf32>
    %21 = arith.mulf %18, %20 : vector<4x128xf32>
    %c1 = arith.constant 1 : index
    %c0_4 = arith.constant 0 : index
    %22 = vector.load %arg2[%c1, %c0_4] : memref<2x128xf32, #tpu.memory_space<vmem>>, vector<1x128xf32>
    %23 = vector.broadcast %22 : vector<1x128xf32> to vector<4x128xf32>
    %24 = arith.addf %21, %23 : vector<4x128xf32>
    %25 = math.sin %24 : vector<4x128xf32>
    %c0_5 = arith.constant 0 : index
    %c0_6 = arith.constant 0 : index
    %26 = vector.load %arg3[%c0_5, %c0_6] : memref<4x128xf32, #tpu.memory_space<vmem>>, vector<4x128xf32>
    tpu.vector_store %arg3[%c0_5, %c0_6], %25 {strides = array<i32>} : memref<4x128xf32, #tpu.memory_space<vmem>>, vector<4x128xf32>,
    return
  }
  func.func @transform_0(%arg0: i32) -> (i32, i32) {
    %c0_i32 = arith.constant 0 : i32
    %c0_i32_0 = arith.constant 0 : i32
    return %arg0, %c0_i32 : i32, i32
  }
  func.func @transform_1(%arg0: i32) -> (i32, i32) {
    %c0_i32 = arith.constant 0 : i32
    %c0_i32_0 = arith.constant 0 : i32
    %c0_i32_1 = arith.constant 0 : i32
    return %c0_i32, %c0_i32_0 : i32, i32
  }
  func.func @transform_2(%arg0: i32) -> (i32, i32) {
    %c0_i32 = arith.constant 0 : i32
    %c0_i32_0 = arith.constant 0 : i32
    return %arg0, %c0_i32 : i32, i32
  }
}

</mosaic_0001>

<bundles_post_ra>
// kernel: forward.1
= control target key start
LH: loop header
LB: loop body
LE: loop exit
PB: predicated region body
PF: predicated region fallthrough
CT: control target
= control target key end

     0   :  { %v188_v0 = vmov 0   ;;  %v189_v2 = vmov 2   ;;  %v190_v6 = vmov 1   ;;  %v191_v7 = vmov 3   ;;  %s246_s0 = inlined_call_operand.vmem [shape: f32[4,4], index: 0, kind: input, shape index: {}]   ;;  %s247_s1 = inlined_call_operand.vmem [shape: f32[2,128], index: 1, kind: input, shape index: {}]   ;;  %s248_s2 = inlined_call_operand.vmem [shape: f32[4,128], index: 2, kind: output, shape index: {}]  }
   0x1   :  { %179 = vset.pattern.permute.xlu0 %v188_v0  ;;  %v11_v1 = vld [vmem:[%s246_s0] sm:$0xf]  ;;  %181 = vset.pattern.permute.xlu1 %v189_v2  ;;  %vm32_vm0 = vcmask 261120   ;;  %vm34_vm1 = vcmask 523264   ;;  %vm36_vm2 = vcmask 785408  }
   0x2   :  { %v12_v3 = vmax.f32 %v11_v1, 0.0  ;;  %v159_v13 = vld [vmem:[%s247_s1] ss:$0 sm:$0xff]  ;;  %v160_v15 = vld [vmem:[%s247_s1 + $0x1] ss:$0 sm:$0xff] }
   0x3   :  { %v192_v29 = vmov 683565275   ;;  %v193_v31 = vmov 2475754826   ;;  %v194_v34 = vmov 2131351028  }
   0x4   :  { %v13_v4 = vmin.f32 %v12_v3, 366.0  ;;  %v195_v37 = vmov 2102212464   ;;  %v196_v40 = vmov 920167782  }
   0x5   :  { %v197_v43 = vmov 1326507024  }
   0x6   :  { %v14_v5 = vfloor.f32 %v13_v4 }
   0x8   :  { %17 = vperm.xlu0 %179, %v14_v5   ;;  %25 = vperm.xlu1 %181, %v14_v5  }
   0xc   :  { %180 = vset.pattern.permute.xlu0 %v190_v6  ;;  %182 = vset.pattern.permute.xlu1 %v191_v7 }
   0xd   :  { %21 = vperm.xlu0 %180, %v14_v5   ;;  %29 = vperm.xlu1 %182, %v14_v5  }
  0x11   :  { %183 = vset.pattern.permute.xlu0 %v191_v7 }
  0x87   :  { %v18_v8 = vpop.permute.xlu0 %17  ;;  %v26_v9 = vpop.permute.xlu1 %25 }
  0x8c   :  { %v22_v10 = vpop.permute.xlu0 %21  ;;  %v30_v11 = vpop.permute.xlu1 %29 }
  0x8d   :  { %v33_v12 = vsel %vm32_vm0, %v18_v8, %v22_v10 }
  0x8e   :  { %v35_v14 = vsel %vm34_vm1, %v33_v12, %v26_v9 }
  0x8f   :  { %v37_v16 = vsel %vm36_vm2, %v35_v14, %v30_v11 }
  0x90   :  { %v43_v17 = vmul.f32 %v159_v13, %v37_v16 }
  0x92   :  { %v222_v18 = vadd.f32 %v160_v15, %v43_v17 }
  0x94   :  { %v53_v19 = vand.u32 2139095040, %v222_v18  ;;  %v50_v23 = vand.u32 2147483647, %v222_v18  ;;  %vm52_vm10 = vcmp.lt.s32.totalorder %v222_v18, 0  ;;  %vm142_vm15 = vweird.f32 %v222_v18 }
  0x96   :  { %v54_v20 = vshrl.u32 %v53_v19, 23  ;;  %v57_v26 = vand.u32 8388607, %v50_v23  ;;  %vm51_vm11 = vcmp.le.f32.partialorder %v50_v23, 0.7853982 }
  0x98   :  { %v161_v21 = vadd.s32 4294967169, %v54_v20  ;;  %v58_v45 = vor.u32 8388608, %v57_v26 }
  0x9a   :  { %v60_v22 = vadd.s32 1, %v161_v21  ;;  %v98_v59 = vshll.u32 %v58_v45, 8 }
  0x9c   :  { %vm61_vm3 = vcmp.gt.s32.totalorder %v60_v22, 0 }
  0x9d   :  { %v62_v24 = vsel %vm61_vm3, %v60_v22, 0 }
  0x9e   :  { %v64_v25 = vand.u32 31, %v62_v24  ;;  %v63_v28 = vshrl.u32 %v62_v24, 5 }
  0xa0   :  { %v65_v27 = vsub.s32 32, %v64_v25  ;;  %v67_v30 = vshll.u32 %v192_v29, %v64_v25  ;;  %v70_v32 = vshll.u32 %v193_v31, %v64_v25  ;;  %v73_v36 = vshll.u32 %v194_v34, %v64_v25 }
  0xa1   :  { %v76_v39 = vshll.u32 %v195_v37, %v64_v25  ;;  %v79_v42 = vshll.u32 %v196_v40, %v64_v25  ;;  %vm82_vm4 = vcmp.lt.s32.totalorder %v63_v28, 1  ;;  %vm85_vm5 = vcmp.lt.s32.totalorder %v63_v28, 4 }
  0xa2   :  { %v68_v33 = vshrl.u32 %v193_v31, %v65_v27  ;;  %v71_v35 = vshrl.u32 %v194_v34, %v65_v27  ;;  %v74_v38 = vshrl.u32 %v195_v37, %v65_v27  ;;  %v77_v41 = vshrl.u32 %v196_v40, %v65_v27 }
  0xa3   :  { %v80_v44 = vshrl.u32 %v197_v43, %v65_v27  ;;  %v66_v54 = vshrl.u32 %v192_v29, %v65_v27  ;;  %vm84_vm6 = vcmp.lt.s32.totalorder %v63_v28, 3  ;;  %vm83_vm7 = vcmp.lt.s32.totalorder %v63_v28, 2 }
  0xa4   :  { %v69_v46 = vor.u32 %v68_v33, %v67_v30  ;;  %v72_v47 = vor.u32 %v71_v35, %v70_v32  ;;  %v75_v48 = vor.u32 %v74_v38, %v73_v36  ;;  %v78_v49 = vor.u32 %v77_v41, %v76_v39 }
  0xa5   :  { %v81_v50 = vor.u32 %v80_v44, %v79_v42 }
  0xa6   :  { %v87_v51 = vsel %vm85_vm5, %v75_v48, 2102212464  ;;  %v90_v52 = vsel %vm82_vm4, %v69_v46, %v72_v47  ;;  %v94_v53 = vsel %vm82_vm4, %v72_v47, %v75_v48  ;;  %v91_v55 = vsel %vm85_vm5, %v78_v49, 920167782 }
  0xa7   :  { %v95_v56 = vsel %vm85_vm5, %v81_v50, 1326507024  ;;  %v92_v57 = vsel %vm84_vm6, %v75_v48, %v91_v55  ;;  %v86_v60 = vsel %vm82_vm4, %v66_v54, %v69_v46  ;;  %v88_v61 = vsel %vm84_vm6, %v72_v47, %v87_v51 }
  0xa8   :  { %v96_v58 = vsel %vm84_vm6, %v78_v49, %v95_v56  ;;  %v93_v62 = vsel %vm83_vm7, %v90_v52, %v92_v57  ;;  %v89_v4 = vsel %vm83_vm7, %v86_v60, %v88_v61 }
  0xa9   :  { %v97_v63 = vsel %vm83_vm7, %v94_v53, %v96_v58  ;;  %v231_v2 = vmul.u32.u64.low %v98_v59, %v93_v62  ;;  %v232_v3 = vmul.u32.u64.high %v98_v59, %v93_v62, %v231_v2  ;;  %v105_v6 = vmul.u32 %v98_v59, %v89_v4 }
  0xaa   :  { %v228_v0 = vmul.u32.u64.low %v98_v59, %v97_v63  ;;  %v229_v1 = vmul.u32.u64.high %v98_v59, %v97_v63, %v228_v0 }
  0xab   :  { %v108_v5 = vadd.s32 1, %v232_v3 }
  0xac   :  { %vm107_vm8 = vc.u32 %v229_v1, %v231_v2  ;;  %v106_v19 = vadd.s32 %v231_v2, %v229_v1 }
  0xad   :  { %v109_v7 = vsel %vm107_vm8, %v108_v5, %v232_v3 }
  0xae   :  { %v110_v8 = vadd.s32 %v109_v7, %v105_v6 }
  0xb0   :  { %v111_v9 = vadd.s32 536870912, %v110_v8 }
  0xb2   :  { %v112_v10 = vshrl.u32 %v111_v9, 30 }
  0xb4   :  { %v113_v11 = vshll.u32 %v112_v10, 30  ;;  %v136_v32 = vsub.s32 4, %v112_v10 }
  0xb6   :  { %v114_v12 = vsub.s32 %v110_v8, %v113_v11  ;;  %v137_v35 = vsel %vm52_vm10, %v136_v32, %v112_v10 }
  0xb7   :  { %v139_v37 = vsel %vm51_vm11, 0, %v137_v35 }
  0xb8   :  { %v116_v13 = vsub.s32 0, %v114_v12  ;;  %v143_v38 = vadd.s32 3, %v139_v37 }
  0xba   :  { %v162_v14 = vmin.u32 %v116_v13, %v114_v12  ;;  %v144_v39 = vand.u32 3, %v143_v38 }
  0xbc   :  { %v118_v15 = vclz %v162_v14  ;;  %vm149_vm12 = vcmp.eq.s32.totalorder %v144_v39, 2  ;;  %vm146_vm13 = vcmp.eq.s32.totalorder %v144_v39, 0  ;;  %vm145_vm14 = vcmp.lt.s32.totalorder %v144_v39, 2 }
  0xbe   :  { %v163_v16 = vadd.s32 4294967294, %v118_v15 }
  0xc0   :  { %vm164_vm9 = vcmp.lt.s32.totalorder %v163_v16, 0 }
  0xc1   :  { %v121_v17 = vsel %vm164_vm9, 0, %v163_v16 }
  0xc2   :  { %v122_v20 = vsub.s32 32, %v121_v17  ;;  %v126_v21 = vsub.s32 4294967266, %v121_v17  ;;  %v123_v22 = vshll.u32 %v114_v12, %v121_v17 }
  0xc4   :  { %v124_v24 = vshrl.u32 %v106_v19, %v122_v20  ;;  %v127_v25 = vadd.s32 127, %v126_v21 }
  0xc6   :  { %v125_v26 = vor.u32 %v124_v24, %v123_v22  ;;  %v128_v27 = vshll.u32 %v127_v25, 23 }
  0xc8   :  { %v129_v28 = vor.u32 4788187, %v128_v27  ;;  %v132_v30 = vcvt.s32.f32 %v125_v26 }
  0xca   :  { %v130_v29 = vand.u32 2147483647, %v129_v28 }
  0xcc   :  { %v133_v31 = vmul.f32 %v132_v30, %v130_v29 }
  0xce   :  { %v134_v33 = vxor.u32 2147483648, %v133_v31 }
  0xd0   :  { %v135_v34 = vsel %vm52_vm10, %v134_v33, %v133_v31 }
  0xd1   :  { %v138_v36 = vsel %vm51_vm11, %v222_v18, %v135_v34 }
  0xd2   :  { %184 = vcosq.f32 %v138_v36 }
  0xd3   :  { %186 = vsinq.f32 %v138_v36 }
  0xdc   :  { %v185_v40 = vpop.eup %184 }
  0xdd   :  { %v187_v41 = vpop.eup %186  ;;  %v150_v42 = vxor.u32 2147483648, %v185_v40 }
  0xde   :  { %v147_v43 = vxor.u32 2147483648, %v187_v41 }
  0xdf   :  { %v151_v44 = vsel %vm149_vm12, %v150_v42, %v187_v41 }
  0xe0   :  { %v148_v45 = vsel %vm146_vm13, %v185_v40, %v147_v43 }
  0xe1   :  { %v152_v23 = vsel %vm145_vm14, %v148_v45, %v151_v44 }
  0xe2   :  { %v153_v46 = vsel %vm142_vm15, nan, %v152_v23 }
  0xe3   :  { %154 = vst [vmem:[%s248_s2] sm:$0xf] %v153_v46 }

</bundles_post_ra>
